<compile_context>
chip_gen: v6e
topology: v6e:2x2x1
jax: 0.10.0
libtpu: 0.0.40
codegen_flags: <defaults>
</compile_context>

<pallas_src>
import functools
import math

import jax
import jax.numpy as jnp
from jax.experimental import pallas as pl
from jax.experimental.pallas import tpu as pltpu


_LANE = 128
_NEG_INF = -1e30  # finite stand-in for -inf; relu/softmax results are identical


# ---------------------------------------------------------------------------
# VMEM budgeting helpers (generation-aware: v5e/v6e 128 MiB, v7x 64 MiB).
# ---------------------------------------------------------------------------
def _vmem_capacity_bytes():
    try:
        cap = getattr(pltpu.get_tpu_info(), "vmem_capacity_bytes", None)
    except Exception:
        cap = None
    return int(cap) if cap else (64 << 20)  # conservative (v7x) fallback


def _vmem_limit_bytes(working_bytes):
    cap = (_vmem_capacity_bytes() * 3) // 4  # leave headroom for Mosaic internals
    return int(min(max(int(working_bytes) + (4 << 20), 16 << 20), cap))


def _round_up(x, m):
    return ((x + m - 1) // m) * m


def _pick_row_tile(t, cap_rows):
    """Largest multiple-of-8 divisor of t that is <= cap_rows (else t itself)."""
    c = min(max(cap_rows, 8), t)
    c -= c % 8
    while c >= 8:
        if t % c == 0:
            return c
        c -= 8
    return t  # full-extent block is always legal


# ---------------------------------------------------------------------------
# 1) Fused QKV projection: x @ W + b, emitted directly head-major.
#    out[b, plane, h, t, :] = (x[b, t] @ W + b)[plane*nh*hd + h*hd : ... + hd]
# ---------------------------------------------------------------------------
def _qkv_proj_kernel(x_ref, w_ref, b_ref, o_ref, *, n_head, head_dim):
    acc = jnp.dot(x_ref[0], w_ref[...], preferred_element_type=jnp.float32)
    acc = (acc + b_ref[...].astype(jnp.float32)).astype(o_ref.dtype)
    # VMEM-only re-layout (tm, 3*nh*hd) -> (3, nh, tm, hd) via static lane slices;
    # this is what removes the HBM q/k/v transposes between the two pallas_calls.
    for p in range(3):
        for h in range(n_head):
            c0 = (p * n_head + h) * head_dim
            o_ref[0, p, h] = acc[:, c0:c0 + head_dim]


def _qkv_projection(x, w_attn, b_attn, *, n_head, head_dim):
    b, t, c = x.shape
    d3 = 3 * n_head * head_dim
    assert w_attn.shape == (c, d3) and b_attn.shape == (d3,)
    isz = jnp.dtype(x.dtype).itemsize
    hd_pad = _round_up(head_dim, _LANE)

    w_bytes = c * d3 * isz  # single-buffered weight
    per_row = 2 * c * isz + d3 * 4 + 2 * 3 * n_head * hd_pad * isz
    budget = (_vmem_capacity_bytes() // 2) - w_bytes
    cap_rows = max(8, min(1024, budget // max(per_row, 1)))
    tm = _pick_row_tile(t, cap_rows)

    working = w_bytes + d3 * isz + tm * per_row
    cost = pl.CostEstimate(
        flops=int(2 * b * t * c * d3),
        transcendentals=0,
        bytes_accessed=int((b * t * c + c * d3 + d3 + b * t * d3) * isz))

    kernel = functools.partial(_qkv_proj_kernel, n_head=n_head, head_dim=head_dim)
    return pl.pallas_call(
        kernel,
        out_shape=jax.ShapeDtypeStruct((b, 3, n_head, t, head_dim), x.dtype),
        grid_spec=pltpu.PrefetchScalarGridSpec(
            num_scalar_prefetch=0,
            grid=(b, t // tm),
            in_specs=[
                pl.BlockSpec((1, tm, c), lambda bi, i: (bi, i, 0)),
                pl.BlockSpec((c, d3), lambda bi, i: (0, 0),
                             pipeline_mode=pl.Buffered(1)),
                pl.BlockSpec((1, d3), lambda bi, i: (0, 0),
                             pipeline_mode=pl.Buffered(1)),
            ],
            out_specs=pl.BlockSpec((1, 3, n_head, tm, head_dim),
                                   lambda bi, i: (bi, 0, 0, i, 0)),
        ),
        compiler_params=pltpu.CompilerParams(
            dimension_semantics=("parallel", "parallel"),
            vmem_limit_bytes=_vmem_limit_bytes(working)),
        cost_estimate=cost,
    )(x, w_attn, b_attn.reshape(1, d3))


# ---------------------------------------------------------------------------
# 2) Attention + selection + memory penalty.  Grid = (B, n_head); FF lives in a
#    VMEM scratch across the head axis and is computed once at head == 0.
# ---------------------------------------------------------------------------
def _attn_penalty_kernel(q_ref, k_ref, v_ref, y_ref, m_ref, ff_ref, *,
                         scale, tau, protect_bos, prevent_self):
    h = pl.program_id(1)
    t = q_ref.shape[-2]
    row = jax.lax.broadcasted_iota(jnp.int32, (t, t), 0)
    col = jax.lax.broadcasted_iota(jnp.int32, (t, t), 1)
    causal = col <= row

    q = q_ref[0, 0, 0]                       # (T, hd), input dtype (bf16 -> bf16 MXU)
    k = k_ref[0, 0, 0]
    att = jax.lax.dot_general(q, k, (((1,), (1,)), ((), ())),
                              preferred_element_type=jnp.float32) * scale

    # ---- selection scores, exclusive cumsum, memory penalty: head 0 only ----
    @pl.when(h == 0)
    def _():
        s = jnp.where(causal, jnp.maximum(att, 0.0), 0.0)        # relu + causal
        if protect_bos:
            s = jnp.where(col >= 1, s, 0.0)                      # never penalize BOS key
        if prevent_self:
            s = jnp.where(row != col, s, 0.0)                    # token can't mask itself
        # FF[i, j] = sum_{k<i} s[k, j] as one MXU matmul (strict-lower-tri @ S).
        # (For very long T this becomes a blocked two-level cumsum.)
        strict_lower = (col < row).astype(jnp.float32)
        ff = jnp.dot(strict_lower, s, preferred_element_type=jnp.float32)
        ff_ref[...] = ff
        # M[i, j] = i - sum_k clamp(FF[j, k], 0, tau)/tau  — rank-1 in i, so a lane
        # reduce + tiny (T,1) transpose replaces the former ones @ FF^T matmul.
        ff_sum = jnp.sum(jnp.clip(ff, 0.0, tau), axis=-1, keepdims=True)   # (T, 1)
        m_ref[0] = row.astype(jnp.float32) - jnp.transpose(ff_sum) * (1.0 / tau)

    # ---- penalized, causally masked softmax (mask + FF fused in one where) ----
    logits = jnp.where(causal, att - ff_ref[...], _NEG_INF)
    logits = logits - jnp.max(logits, axis=-1, keepdims=True)
    p = jnp.exp(logits)
    inv = pl.reciprocal(jnp.sum(p, axis=-1, keepdims=True))      # 1 recip/row, then mul
    probs = (p * inv).astype(v_ref.dtype)
    y = jnp.dot(probs, v_ref[0, 0, 0], preferred_element_type=jnp.float32)
    y_ref[0, 0] = y.astype(y_ref.dtype)


def _attention_with_penalty(qkv_heads, *, n_head, head_dim, tau, protect_bos,
                            prevent_self, out_dtype):
    b, three, nh, t, hd = qkv_heads.shape
    assert three == 3 and nh == n_head and hd == head_dim
    isz = jnp.dtype(qkv_heads.dtype).itemsize
    hd_pad = _round_up(head_dim, _LANE)
    t8 = _round_up(t, 8)
    tl = _round_up(t, _LANE)

    working = (3 * 2 + 2) * t8 * hd_pad * isz          # q/k/v (2-buf) + y block
    working += (2 + 1 + 6) * t8 * tl * 4               # m out, ff scratch, live temps

    cost = pl.CostEstimate(
        flops=int(b * n_head * 4 * t * t * head_dim + b * 2 * t * t * t),
        transcendentals=int(b * n_head * t * t),
        bytes_accessed=int(b * 3 * n_head * t * head_dim * isz
                           + b * n_head * t * head_dim * isz + b * t * t * 4))

    kernel = functools.partial(
        _attn_penalty_kernel, scale=1.0 / math.sqrt(head_dim), tau=tau,
        protect_bos=protect_bos, prevent_self=prevent_self)

    qkv_blk = (1, 1, 1, t, head_dim)
    return pl.pallas_call(
        kernel,
        out_shape=(jax.ShapeDtypeStruct((b, n_head, t, head_dim), out_dtype),
                   jax.ShapeDtypeStruct((b, t, t), jnp.float32)),
        grid_spec=pltpu.PrefetchScalarGridSpec(
            num_scalar_prefetch=0,
            grid=(b, n_head),
            in_specs=[
                pl.BlockSpec(qkv_blk, lambda bi, hi: (bi, 0, hi, 0, 0)),  # q
                pl.BlockSpec(qkv_blk, lambda bi, hi: (bi, 1, hi, 0, 0)),  # k
                pl.BlockSpec(qkv_blk, lambda bi, hi: (bi, 2, hi, 0, 0)),  # v
            ],
            out_specs=[
                pl.BlockSpec((1, 1, t, head_dim), lambda bi, hi: (bi, hi, 0, 0)),
                pl.BlockSpec((1, t, t), lambda bi, hi: (bi, 0, 0)),
            ],
            scratch_shapes=[pltpu.VMEM((t, t), jnp.float32)],
        ),
        compiler_params=pltpu.CompilerParams(
            dimension_semantics=("parallel", "arbitrary"),
            vmem_limit_bytes=_vmem_limit_bytes(working)),
        cost_estimate=cost,
    )(qkv_heads, qkv_heads, qkv_heads)


# ---------------------------------------------------------------------------
# 3) Output projection: out[b, t] = sum_h y[b, h, t] @ W_proj[h] + b_proj
#    (heads are the reduction grid axis, so y never needs an HBM transpose).
# ---------------------------------------------------------------------------
def _head_proj_kernel(y_ref, w_ref, b_ref, o_ref, acc_ref):
    h = pl.program_id(1)

    @pl.when(h == 0)
    def _():
        acc_ref[...] = jnp.zeros_like(acc_ref)

    acc_ref[...] += jnp.dot(y_ref[0, 0], w_ref[0],
                            preferred_element_type=jnp.float32)

    @pl.when(h == pl.num_programs(1) - 1)
    def _():
        o_ref[0] = (acc_ref[...] + b_ref[...].astype(jnp.float32)).astype(o_ref.dtype)


def _head_projection(y_heads, w_proj, b_proj, *, out_dtype):
    b, nh, t, hd = y_heads.shape
    d = nh * hd
    c = w_proj.shape[-1]
    assert w_proj.shape == (d, c) and b_proj.shape == (c,)
    w3 = w_proj.reshape(nh, hd, c)
    isz = jnp.dtype(y_heads.dtype).itemsize
    hd_pad = _round_up(hd, _LANE)

    working = (2 * t * hd_pad * isz + 2 * hd * c * isz + c * isz
               + 2 * t * c * isz + t * c * 4)
    cost = pl.CostEstimate(
        flops=int(2 * b * t * d * c),
        transcendentals=0,
        bytes_accessed=int((b * nh * t * hd + d * c + c + b * t * c) * isz))

    return pl.pallas_call(
        _head_proj_kernel,
        out_shape=jax.ShapeDtypeStruct((b, t, c), out_dtype),
        grid_spec=pltpu.PrefetchScalarGridSpec(
            num_scalar_prefetch=0,
            grid=(b, nh),
            in_specs=[
                pl.BlockSpec((1, 1, t, hd), lambda bi, hi: (bi, hi, 0, 0)),
                pl.BlockSpec((1, hd, c), lambda bi, hi: (hi, 0, 0)),
                pl.BlockSpec((1, c), lambda bi, hi: (0, 0),
                             pipeline_mode=pl.Buffered(1)),
            ],
            out_specs=pl.BlockSpec((1, t, c), lambda bi, hi: (bi, 0, 0)),
            scratch_shapes=[pltpu.VMEM((t, c), jnp.float32)],
        ),
        compiler_params=pltpu.CompilerParams(
            dimension_semantics=("parallel", "arbitrary"),
            vmem_limit_bytes=_vmem_limit_bytes(working)),
        cost_estimate=cost,
    )(y_heads, w3, b_proj.reshape(1, c))


# ---------------------------------------------------------------------------
# Full module forward.
# ---------------------------------------------------------------------------
def causal_selective_self_attention_with_memory_penalty(
        x, w_attn, b_attn, w_proj, b_proj, *, n_head, head_dim, tau=1.0,
        protect_bos_token=False, prevent_from_masking_myself=False):
    qkv_heads = _qkv_projection(x, w_attn, b_attn,
                                n_head=n_head, head_dim=head_dim)
    y_heads, m_pen = _attention_with_penalty(
        qkv_heads, n_head=n_head, head_dim=head_dim, tau=tau,
        protect_bos=protect_bos_token, prevent_self=prevent_from_masking_myself,
        out_dtype=x.dtype)
    out = _head_projection(y_heads, w_proj, b_proj, out_dtype=x.dtype)
    return out, m_pen[None]                      # M: (1, B, T, T) as in the reference


# ---------------------------------------------------------------------------
# Pure-JAX reference (mirrors the PyTorch forward line by line).
# ---------------------------------------------------------------------------
def _reference_forward(x, w_attn, b_attn, w_proj, b_proj, *, n_head, head_dim,
                       tau, protect_bos_token, prevent_from_masking_myself):
    hp = jax.lax.Precision.HIGHEST
    b, t, c = x.shape
    d = n_head * head_dim
    qkv = jnp.einsum("btc,cd->btd", x, w_attn, precision=hp) + b_attn
    q, k, v = jnp.split(qkv, 3, axis=2)
    q = q.reshape(b, t, n_head, head_dim).transpose(0, 2, 1, 3)
    k = k.reshape(b, t, n_head, head_dim).transpose(0, 2, 1, 3)
    v = v.reshape(b, t, n_head, head_dim).transpose(0, 2, 1, 3)
    att = jnp.einsum("bhid,bhjd->bhij", q, k, precision=hp) * (1.0 / math.sqrt(head_dim))
    causal = jnp.tril(jnp.ones((t, t)))
    att = jnp.where(causal[None, None] == 0, -jnp.inf, att)
    s = jax.nn.relu(att[:, 0])
    if protect_bos_token:
        s_masked = jnp.zeros_like(s).at[..., 1:].set(s[..., 1:])
    else:
        s_masked = s
    if prevent_from_masking_myself:
        s = s_masked * (1.0 - jnp.eye(t))
    else:
        s = s_masked
    s_shifted = jnp.roll(s, 1, axis=-2).at[..., 0, :].set(0.0)
    ff = jnp.cumsum(s_shifted, axis=-2)[:, None]
    ff_clamped = jnp.clip(ff, 0.0, tau)
    ff_sum = ff_clamped.sum(axis=-1)
    positions = jnp.arange(t, dtype=jnp.float32).reshape(1, 1, t, 1)
    m = positions - ff_sum / tau
    att = att - ff
    att = jax.nn.softmax(att, axis=-1)
    y = jnp.einsum("bhij,bhjd->bhid", att, v, precision=hp)
    y = y.transpose(0, 2, 1, 3).reshape(b, t, d)
    y = jnp.einsum("btd,dc->btc", y, w_proj, precision=hp) + b_proj
    return y, m


if __name__ == "__main__":
    B, T = 2, 8
    N_HEAD, HEAD_DIM = 4, 8
    N_EMBD = 32
    TAU = 1.0
    D = N_HEAD * HEAD_DIM

    key = jax.random.PRNGKey(0)
    kx, kw1, kb1, kw2, kb2 = jax.random.split(key, 5)
    x = jax.random.normal(kx, (B, T, N_EMBD), dtype=jnp.float32)
    w_attn = jax.random.normal(kw1, (N_EMBD, 3 * D), dtype=jnp.float32) / math.sqrt(N_EMBD)
    b_attn = jax.random.normal(kb1, (3 * D,), dtype=jnp.float32) * 0.02
    w_proj = jax.random.normal(kw2, (D, N_EMBD), dtype=jnp.float32) / math.sqrt(D)
    b_proj = jax.random.normal(kb2, (N_EMBD,), dtype=jnp.float32) * 0.02

    for protect_bos, prevent_self in [(True, True), (False, False)]:
        y, m = causal_selective_self_attention_with_memory_penalty(
            x, w_attn, b_attn, w_proj, b_proj,
            n_head=N_HEAD, head_dim=HEAD_DIM, tau=TAU,
            protect_bos_token=protect_bos,
            prevent_from_masking_myself=prevent_self)
        jax.block_until_ready((y, m))

        y_exp, m_exp = _reference_forward(
            x, w_attn, b_attn, w_proj, b_proj,
            n_head=N_HEAD, head_dim=HEAD_DIM, tau=TAU,
            protect_bos_token=protect_bos,
            prevent_from_masking_myself=prevent_self)

        assert y.shape == (B, T, N_EMBD) and m.shape == m_exp.shape == (1, B, T, T)
        assert jnp.allclose(y, y_exp, atol=2e-3, rtol=2e-3), \
            f"output mismatch (protect_bos={protect_bos}, prevent_self={prevent_self})"
        assert jnp.allclose(m, m_exp, atol=2e-3, rtol=2e-3), \
            f"memory-penalty mismatch (protect_bos={protect_bos}, prevent_self={prevent_self})"

    print("KERNEL_OK")
</pallas_src>

<mosaic_0001>
module attributes {stable_mosaic.version = 11 : i64} {
  func.func @_qkv_proj_kernel(%arg0: i32, %arg1: i32, %arg2: memref<1x8x32xf32, #tpu.memory_space<vmem>>, %arg3: memref<32x96xf32, #tpu.memory_space<vmem>>, %arg4: memref<1x96xf32, #tpu.memory_space<vmem>>, %arg5: memref<1x3x4x8x8xf32, #tpu.memory_space<vmem>>) attributes {dimension_semantics = [#tpu.dimension_semantics<parallel>, #tpu.dimension_semantics<parallel>], iteration_bounds = array<i64: 2, 1>, scalar_prefetch = 0 : i64, scratch_operands = 0 : i64, tpu.core_type = #tpu.core_type<tc>, window_params = [{transform_indices = @transform_0, window_bounds = array<i64: 1, 8, 32>}, {pipeline_mode = #tpu.pipeline_mode<synchronous>, transform_indices = @transform_1, window_bounds = array<i64: 32, 96>}, {pipeline_mode = #tpu.pipeline_mode<synchronous>, transform_indices = @transform_2, window_bounds = array<i64: 1, 96>}, {transform_indices = @transform_3, window_bounds = array<i64: 1, 3, 4, 8, 8>}]} {
    %c0 = arith.constant 0 : index
    %c0_0 = arith.constant 0 : index
    %c0_1 = arith.constant 0 : index
    %0 = vector.load %arg2[%c0, %c0_0, %c0_1] : memref<1x8x32xf32, #tpu.memory_space<vmem>>, vector<1x8x32xf32>
    %1 = vector.shape_cast %0 : vector<1x8x32xf32> to vector<8x32xf32>
    %c0_2 = arith.constant 0 : index
    %c0_3 = arith.constant 0 : index
    %2 = vector.load %arg3[%c0_2, %c0_3] : memref<32x96xf32, #tpu.memory_space<vmem>>, vector<32x96xf32>
    %cst = arith.constant dense<0.000000e+00> : vector<8x96xf32>
    %3 = tpu.matmul %1, %2, %cst {dimension_numbers = #tpu.dot_dimension_numbers<[1], [0], [0], [1], [0, 0, 1, 1], [], []>} : vector<8x32xf32>, vector<32x96xf32>, vector<8x96xf32> -> vector<8x96xf32>
    %c0_4 = arith.constant 0 : index
    %c0_5 = arith.constant 0 : index
    %4 = vector.load %arg4[%c0_4, %c0_5] : memref<1x96xf32, #tpu.memory_space<vmem>>, vector<1x96xf32>
    %5 = vector.broadcast %4 : vector<1x96xf32> to vector<8x96xf32>
    %6 = arith.addf %3, %5 : vector<8x96xf32>
    %7 = vector.extract_strided_slice %6 {offsets = [0, 0], sizes = [8, 8], strides = [1, 1]} : vector<8x96xf32> to vector<8x8xf32>
    %c0_6 = arith.constant 0 : index
    %c0_7 = arith.constant 0 : index
    %c0_8 = arith.constant 0 : index
    %c0_9 = arith.constant 0 : index
    %c0_10 = arith.constant 0 : index
    %8 = vector.load %arg5[%c0_6, %c0_7, %c0_8, %c0_9, %c0_10] : memref<1x3x4x8x8xf32, #tpu.memory_space<vmem>>, vector<1x1x1x8x8xf32>
    %9 = vector.shape_cast %8 : vector<1x1x1x8x8xf32> to vector<8x8xf32>
    %10 = vector.shape_cast %7 : vector<8x8xf32> to vector<1x1x1x8x8xf32>
    tpu.vector_store %arg5[%c0_6, %c0_7, %c0_8, %c0_9, %c0_10], %10 {strides = array<i32>} : memref<1x3x4x8x8xf32, #tpu.memory_space<vmem>>, vector<1x1x1x8x8xf32>,
    %11 = vector.extract_strided_slice %6 {offsets = [0, 8], sizes = [8, 8], strides = [1, 1]} : vector<8x96xf32> to vector<8x8xf32>
    %c0_11 = arith.constant 0 : index
    %c0_12 = arith.constant 0 : index
    %c1 = arith.constant 1 : index
    %c0_13 = arith.constant 0 : index
    %c0_14 = arith.constant 0 : index
    %12 = vector.load %arg5[%c0_11, %c0_12, %c1, %c0_13, %c0_14] : memref<1x3x4x8x8xf32, #tpu.memory_space<vmem>>, vector<1x1x1x8x8xf32>
    %13 = vector.shape_cast %12 : vector<1x1x1x8x8xf32> to vector<8x8xf32>
    %14 = vector.shape_cast %11 : vector<8x8xf32> to vector<1x1x1x8x8xf32>
    tpu.vector_store %arg5[%c0_11, %c0_12, %c1, %c0_13, %c0_14], %14 {strides = array<i32>} : memref<1x3x4x8x8xf32, #tpu.memory_space<vmem>>, vector<1x1x1x8x8xf32>,
    %15 = vector.extract_strided_slice %6 {offsets = [0, 16], sizes = [8, 8], strides = [1, 1]} : vector<8x96xf32> to vector<8x8xf32>
    %c0_15 = arith.constant 0 : index
    %c0_16 = arith.constant 0 : index
    %c2 = arith.constant 2 : index
    %c0_17 = arith.constant 0 : index
    %c0_18 = arith.constant 0 : index
    %16 = vector.load %arg5[%c0_15, %c0_16, %c2, %c0_17, %c0_18] : memref<1x3x4x8x8xf32, #tpu.memory_space<vmem>>, vector<1x1x1x8x8xf32>
    %17 = vector.shape_cast %16 : vector<1x1x1x8x8xf32> to vector<8x8xf32>
    %18 = vector.shape_cast %15 : vector<8x8xf32> to vector<1x1x1x8x8xf32>
    tpu.vector_store %arg5[%c0_15, %c0_16, %c2, %c0_17, %c0_18], %18 {strides = array<i32>} : memref<1x3x4x8x8xf32, #tpu.memory_space<vmem>>, vector<1x1x1x8x8xf32>,
    %19 = vector.extract_strided_slice %6 {offsets = [0, 24], sizes = [8, 8], strides = [1, 1]} : vector<8x96xf32> to vector<8x8xf32>
    %c0_19 = arith.constant 0 : index
    %c0_20 = arith.constant 0 : index
    %c3 = arith.constant 3 : index
    %c0_21 = arith.constant 0 : index
    %c0_22 = arith.constant 0 : index
    %20 = vector.load %arg5[%c0_19, %c0_20, %c3, %c0_21, %c0_22] : memref<1x3x4x8x8xf32, #tpu.memory_space<vmem>>, vector<1x1x1x8x8xf32>
    %21 = vector.shape_cast %20 : vector<1x1x1x8x8xf32> to vector<8x8xf32>
    %22 = vector.shape_cast %19 : vector<8x8xf32> to vector<1x1x1x8x8xf32>
    tpu.vector_store %arg5[%c0_19, %c0_20, %c3, %c0_21, %c0_22], %22 {strides = array<i32>} : memref<1x3x4x8x8xf32, #tpu.memory_space<vmem>>, vector<1x1x1x8x8xf32>,
    %23 = vector.extract_strided_slice %6 {offsets = [0, 32], sizes = [8, 8], strides = [1, 1]} : vector<8x96xf32> to vector<8x8xf32>
    %c0_23 = arith.constant 0 : index
    %c1_24 = arith.constant 1 : index
    %c0_25 = arith.constant 0 : index
    %c0_26 = arith.constant 0 : index
    %c0_27 = arith.constant 0 : index
    %24 = vector.load %arg5[%c0_23, %c1_24, %c0_25, %c0_26, %c0_27] : memref<1x3x4x8x8xf32, #tpu.memory_space<vmem>>, vector<1x1x1x8x8xf32>
    %25 = vector.shape_cast %24 : vector<1x1x1x8x8xf32> to vector<8x8xf32>
    %26 = vector.shape_cast %23 : vector<8x8xf32> to vector<1x1x1x8x8xf32>
    tpu.vector_store %arg5[%c0_23, %c1_24, %c0_25, %c0_26, %c0_27], %26 {strides = array<i32>} : memref<1x3x4x8x8xf32, #tpu.memory_space<vmem>>, vector<1x1x1x8x8xf32>,
    %27 = vector.extract_strided_slice %6 {offsets = [0, 40], sizes = [8, 8], strides = [1, 1]} : vector<8x96xf32> to vector<8x8xf32>
    %c0_28 = arith.constant 0 : index
    %c1_29 = arith.constant 1 : index
    %c1_30 = arith.constant 1 : index
    %c0_31 = arith.constant 0 : index
    %c0_32 = arith.constant 0 : index
    %28 = vector.load %arg5[%c0_28, %c1_29, %c1_30, %c0_31, %c0_32] : memref<1x3x4x8x8xf32, #tpu.memory_space<vmem>>, vector<1x1x1x8x8xf32>
    %29 = vector.shape_cast %28 : vector<1x1x1x8x8xf32> to vector<8x8xf32>
    %30 = vector.shape_cast %27 : vector<8x8xf32> to vector<1x1x1x8x8xf32>
    tpu.vector_store %arg5[%c0_28, %c1_29, %c1_30, %c0_31, %c0_32], %30 {strides = array<i32>} : memref<1x3x4x8x8xf32, #tpu.memory_space<vmem>>, vector<1x1x1x8x8xf32>,
    %31 = vector.extract_strided_slice %6 {offsets = [0, 48], sizes = [8, 8], strides = [1, 1]} : vector<8x96xf32> to vector<8x8xf32>
    %c0_33 = arith.constant 0 : index
    %c1_34 = arith.constant 1 : index
    %c2_35 = arith.constant 2 : index
    %c0_36 = arith.constant 0 : index
    %c0_37 = arith.constant 0 : index
    %32 = vector.load %arg5[%c0_33, %c1_34, %c2_35, %c0_36, %c0_37] : memref<1x3x4x8x8xf32, #tpu.memory_space<vmem>>, vector<1x1x1x8x8xf32>
    %33 = vector.shape_cast %32 : vector<1x1x1x8x8xf32> to vector<8x8xf32>
    %34 = vector.shape_cast %31 : vector<8x8xf32> to vector<1x1x1x8x8xf32>
    tpu.vector_store %arg5[%c0_33, %c1_34, %c2_35, %c0_36, %c0_37], %34 {strides = array<i32>} : memref<1x3x4x8x8xf32, #tpu.memory_space<vmem>>, vector<1x1x1x8x8xf32>,
    %35 = vector.extract_strided_slice %6 {offsets = [0, 56], sizes = [8, 8], strides = [1, 1]} : vector<8x96xf32> to vector<8x8xf32>
    %c0_38 = arith.constant 0 : index
    %c1_39 = arith.constant 1 : index
    %c3_40 = arith.constant 3 : index
    %c0_41 = arith.constant 0 : index
    %c0_42 = arith.constant 0 : index
    %36 = vector.load %arg5[%c0_38, %c1_39, %c3_40, %c0_41, %c0_42] : memref<1x3x4x8x8xf32, #tpu.memory_space<vmem>>, vector<1x1x1x8x8xf32>
    %37 = vector.shape_cast %36 : vector<1x1x1x8x8xf32> to vector<8x8xf32>
    %38 = vector.shape_cast %35 : vector<8x8xf32> to vector<1x1x1x8x8xf32>
    tpu.vector_store %arg5[%c0_38, %c1_39, %c3_40, %c0_41, %c0_42], %38 {strides = array<i32>} : memref<1x3x4x8x8xf32, #tpu.memory_space<vmem>>, vector<1x1x1x8x8xf32>,
    %39 = vector.extract_strided_slice %6 {offsets = [0, 64], sizes = [8, 8], strides = [1, 1]} : vector<8x96xf32> to vector<8x8xf32>
    %c0_43 = arith.constant 0 : index
    %c2_44 = arith.constant 2 : index
    %c0_45 = arith.constant 0 : index
    %c0_46 = arith.constant 0 : index
    %c0_47 = arith.constant 0 : index
    %40 = vector.load %arg5[%c0_43, %c2_44, %c0_45, %c0_46, %c0_47] : memref<1x3x4x8x8xf32, #tpu.memory_space<vmem>>, vector<1x1x1x8x8xf32>
    %41 = vector.shape_cast %40 : vector<1x1x1x8x8xf32> to vector<8x8xf32>
    %42 = vector.shape_cast %39 : vector<8x8xf32> to vector<1x1x1x8x8xf32>
    tpu.vector_store %arg5[%c0_43, %c2_44, %c0_45, %c0_46, %c0_47], %42 {strides = array<i32>} : memref<1x3x4x8x8xf32, #tpu.memory_space<vmem>>, vector<1x1x1x8x8xf32>,
    %43 = vector.extract_strided_slice %6 {offsets = [0, 72], sizes = [8, 8], strides = [1, 1]} : vector<8x96xf32> to vector<8x8xf32>
    %c0_48 = arith.constant 0 : index
    %c2_49 = arith.constant 2 : index
    %c1_50 = arith.constant 1 : index
    %c0_51 = arith.constant 0 : index
    %c0_52 = arith.constant 0 : index
    %44 = vector.load %arg5[%c0_48, %c2_49, %c1_50, %c0_51, %c0_52] : memref<1x3x4x8x8xf32, #tpu.memory_space<vmem>>, vector<1x1x1x8x8xf32>
    %45 = vector.shape_cast %44 : vector<1x1x1x8x8xf32> to vector<8x8xf32>
    %46 = vector.shape_cast %43 : vector<8x8xf32> to vector<1x1x1x8x8xf32>
    tpu.vector_store %arg5[%c0_48, %c2_49, %c1_50, %c0_51, %c0_52], %46 {strides = array<i32>} : memref<1x3x4x8x8xf32, #tpu.memory_space<vmem>>, vector<1x1x1x8x8xf32>,
    %47 = vector.extract_strided_slice %6 {offsets = [0, 80], sizes = [8, 8], strides = [1, 1]} : vector<8x96xf32> to vector<8x8xf32>
    %c0_53 = arith.constant 0 : index
    %c2_54 = arith.constant 2 : index
    %c2_55 = arith.constant 2 : index
    %c0_56 = arith.constant 0 : index
    %c0_57 = arith.constant 0 : index
    %48 = vector.load %arg5[%c0_53, %c2_54, %c2_55, %c0_56, %c0_57] : memref<1x3x4x8x8xf32, #tpu.memory_space<vmem>>, vector<1x1x1x8x8xf32>
    %49 = vector.shape_cast %48 : vector<1x1x1x8x8xf32> to vector<8x8xf32>
    %50 = vector.shape_cast %47 : vector<8x8xf32> to vector<1x1x1x8x8xf32>
    tpu.vector_store %arg5[%c0_53, %c2_54, %c2_55, %c0_56, %c0_57], %50 {strides = array<i32>} : memref<1x3x4x8x8xf32, #tpu.memory_space<vmem>>, vector<1x1x1x8x8xf32>,
    %51 = vector.extract_strided_slice %6 {offsets = [0, 88], sizes = [8, 8], strides = [1, 1]} : vector<8x96xf32> to vector<8x8xf32>
    %c0_58 = arith.constant 0 : index
    %c2_59 = arith.constant 2 : index
    %c3_60 = arith.constant 3 : index
    %c0_61 = arith.constant 0 : index
    %c0_62 = arith.constant 0 : index
    %52 = vector.load %arg5[%c0_58, %c2_59, %c3_60, %c0_61, %c0_62] : memref<1x3x4x8x8xf32, #tpu.memory_space<vmem>>, vector<1x1x1x8x8xf32>
    %53 = vector.shape_cast %52 : vector<1x1x1x8x8xf32> to vector<8x8xf32>
    %54 = vector.shape_cast %51 : vector<8x8xf32> to vector<1x1x1x8x8xf32>
    tpu.vector_store %arg5[%c0_58, %c2_59, %c3_60, %c0_61, %c0_62], %54 {strides = array<i32>} : memref<1x3x4x8x8xf32, #tpu.memory_space<vmem>>, vector<1x1x1x8x8xf32>,
    return
  }
  func.func @transform_0(%arg0: i32, %arg1: i32) -> (i32, i32, i32) {
    %c0_i32 = arith.constant 0 : i32
    %c0_i32_0 = arith.constant 0 : i32
    return %arg0, %arg1, %c0_i32 : i32, i32, i32
  }
  func.func @transform_1(%arg0: i32, %arg1: i32) -> (i32, i32) {
    %c0_i32 = arith.constant 0 : i32
    %c0_i32_0 = arith.constant 0 : i32
    %c0_i32_1 = arith.constant 0 : i32
    return %c0_i32, %c0_i32_0 : i32, i32
  }
  func.func @transform_2(%arg0: i32, %arg1: i32) -> (i32, i32) {
    %c0_i32 = arith.constant 0 : i32
    %c0_i32_0 = arith.constant 0 : i32
    %c0_i32_1 = arith.constant 0 : i32
    return %c0_i32, %c0_i32_0 : i32, i32
  }
  func.func @transform_3(%arg0: i32, %arg1: i32) -> (i32, i32, i32, i32, i32) {
    %c0_i32 = arith.constant 0 : i32
    %c0_i32_0 = arith.constant 0 : i32
    %c0_i32_1 = arith.constant 0 : i32
    %c0_i32_2 = arith.constant 0 : i32
    return %arg0, %c0_i32, %c0_i32_0, %arg1, %c0_i32_1 : i32, i32, i32, i32, i32
  }
}

</mosaic_0001>

<bundles_post_ra>
// kernel: tpu_custom_call.1
= control target key start
LH: loop header
LB: loop body
LE: loop exit
PB: predicated region body
PF: predicated region fallthrough
CT: control target
= control target key end

     0   :  { %8 = vsyncpa [#allocation3], 0  ;;  %s997_s0 = inlined_call_operand.hbm [shape: f32[2,8,32], index: 0, kind: input, shape index: {}]   ;;  %s998_s1 = inlined_call_operand.hbm [shape: f32[32,96], index: 1, kind: input, shape index: {}]   ;;  %s999_s2 = inlined_call_operand.vmem [shape: f32[1,96], index: 2, kind: input, shape index: {}]   ;;  %s1000_s3 = inlined_call_operand.hbm [shape: f32[2,3,4,8,8], index: 3, kind: output, shape index: {}]  }
   0x1   :  { %10 = vsyncpa [#allocation3 + $0x1], 0 }
   0x2   :  { %11 = vsyncpa [#allocation6], 0 }
   0x3   :  { %12 = vsyncpa [#allocation4], 0 }
   0x4   :  { %14 = vsyncpa [#allocation4 + $0x1], 0  ;;  %s785_s12 = smov 0   ;;  %s787_s13 = smov 0  }
   0x5   :  { %s789_s14 = smov 0   ;;  %s791_s15 = smov 0  }
   0x6   :  { %s793_s16 = smov 0   ;;  %s795_s17 = smov 0  }
   0x7 LB: > { %s471_s18 = sadd.s32 4294967295, %s743_s17   ;;  %s472_s19 = sadd.s32 4294967294, %s743_s17   ;;  %s743_s17 = sphi %s795_s17, %s20_s17   ;;  %s739_s16 = sphi %s793_s16, %s1018_s16   ;;  %s735_s15 = sphi %s791_s15, %s1017_s15   ;;  %s731_s14 = sphi %s789_s14, %s1016_s14   ;;  %s727_s13 = sphi %s787_s13, %s1015_s13   ;;  %s723_s12 = sphi %s785_s12, %s1014_s12  }
   0x8   : > { %p54_p0 = scmp.ne.s32.totalorder %s727_s13, %s723_s12  ;;  %p819_p1 = scmp.eq.s32.totalorder %s471_s18, 0 }
   0x9   : > { %p823_p2 = scmp.eq.s32.totalorder %s471_s18, 1  ;;  %p128_p3 = scmp.eq.s32.totalorder %s472_s19, 1 }
   0xa   : > { %p829_p4 = por %p819_p1, %p54_p0  ;;  %p473_p5 = scmp.ge.s32.totalorder %s743_s17, 1 }
   0xb   : > { %p834_p6 = por %p128_p3, %p54_p0  ;;  %p135_p7 = scmp.lt.s32.totalorder %s743_s17, 3 }
   0xc   : > { %s1004_s22 = scalar_select %p829_p4, 1, 0 }
   0xd   : > { %s1005_s23 = scalar_select %p834_p6, 1, 0 }
   0xe   : > { %p839_p8 = pnand %p473_p5, %p135_p7  ;;  %s745_s25 = smov [#allocation5]  }
   0xf   : > { %s147_s26 = sshll.u32 %s745_s25, 4  ;;  %s32_s28 = sadd.s32 1, %s739_s16  ;;  %s148_s26 = int_to_ptr.vmem [resolvable:$true] %s147_s26 }
  0x10   : > { %p523_p9 = pneg %p839_p8  ;;  %s616_s29 = scalar_lea.vmem %s148_s26, 512 }
  0x11   : > { %p617_p13 = scmp.ne.s32.totalorder %s148_s26, %s616_s29  ;;  %p624_p5 = scmp.lt.s32.totalorder %s148_s26, %s148_s26 }
  0x12   : > { %p848_p11 = pnand %p523_p9, %p819_p1  ;;  %p625_p7 = scmp.lt.s32.totalorder %s616_s29, %s616_s29 }
  0x14   : > { %p607_p12 = pneg %p848_p11  ;;  %p626_p6 = por %p625_p7, %p624_p5 }
  0x16   : > { %p619_p0 = pnand %p617_p13, %p607_p12 }
  0x18   : > { %p620_p3 = pneg %p619_p0 }
  0x1a   : > { %p627_p4 = pnand %p626_p6, %p620_p3 }
  0x1c   : > { %630 = shalt.err (!%p627_p4)
}
  0x1d   : > { %s746_s30 = smov 128   ;;  %s747_s4 = smov 8  }
  0x1e   : > { %526 = dma.hbm_to_vmem [thread:$0]  (!%p848_p11), %s998_s1, 512, %s148_s26, [#allocation6], %s746_s30, %s746_s30, %s747_s4  }
  0x1f   : > { %p34_p6 = scmp.ge.s32.totalorder %s32_s28, 2  ;;  %s41_s7 = sadd.s32 1, %s731_s14 }
  0x20   : > { %p48_p4 = scmp.ne.s32.totalorder %s731_s14, %s727_s13  ;;  %p49_p9 = scmp.eq.s32.totalorder %s743_s17, 0 }
  0x21   : > { %s1020_s28 = smov (%p34_p6, %s32_s28), 0  ;;  %p536_p0 = scmp.lt.s32.totalorder %s743_s17, 2 }
  0x22   : > { %p866_p12 = por %p49_p9, %p48_p4  ;;  %p872_p13 = por %p823_p2, %p48_p4 }
  0x23   : > { %s36_s10 = ssub.s32 %s739_s16, %s1020_s28  ;;  %s164_s11 = sand.u32 1, %s731_s14  }
  0x24   : > { %p39_p11 = scmp.eq.s32.totalorder %s36_s10, 0  ;;  %s476_s18 = sshll.u32 %s164_s11, 3 }
  0x25   : > { %s477_s25 = sshll.u32 %s739_s16, 7  ;;  %s168_s30 = scalar_lea.vmem [#allocation2], %s476_s18 }
  0x26   : > { %s881_s19 = scalar_select %p39_p11, %s731_s14, %s41_s7  }
  0x27   : > { %s174_s29 = scalar_lea.hbm %s997_s0, %s477_s25  ;;  %s176_s4 = sshll.u32 %s168_s30, 4  ;;  %s177_s4 = int_to_ptr.vmem [resolvable:$true] %s176_s4 }
  0x28   : > { %p889_p2 = pnand %p536_p0, %p866_p12  ;;  %s165_s5 = scalar_lea.sflag [#allocation3], %s164_s11 }
  0x29   : > { %s644_s6 = scalar_lea.vmem %s177_s4, 128  ;;  %s748_s7 = smov [#allocation2]  }
  0x2a   : > { %p633_p3 = pneg %p889_p2  ;;  %p645_p5 = scmp.ne.s32.totalorder %s177_s4, %s644_s6 }
  0x2b   : > { %s649_s10 = sshll.u32 %s748_s7, 4  ;;  %s650_s10 = int_to_ptr.vmem [resolvable:$false] %s649_s10 }
  0x2c   : > { %p647_p7 = pnand %p645_p5, %p633_p3  ;;  %s651_s25 = scalar_lea.vmem %s650_s10, 256 }
  0x2d   : > { %p652_p4 = scmp.lt.s32.totalorder %s177_s4, %s650_s10  ;;  %p653_p9 = scmp.lt.s32.totalorder %s651_s25, %s644_s6 }
  0x2e   : > { %p648_p6 = pneg %p647_p7 }
  0x2f   : > { %p654_p11 = por %p653_p9, %p652_p4 }
  0x31   : > { %p655_p10 = pnand %p654_p11, %p648_p6 }
  0x33   : > { %658 = shalt.err (!%p655_p10)
}
  0x34   : > { %530 = dma.hbm_to_vmem [thread:$0]  (!%p889_p2), %s174_s29, 128, %s177_s4, %s165_s5  }
  0x35   : > { %185 = sbr.rel (%p839_p8) target bundleno = 414 (0x19e), region = 32  ;;  %s900_s8 = sand.u32 (!%p839_p8), 1, %s727_s13  }
  0x36   : > { %s479_s11 = sshll.u32 (!%p839_p8), %s900_s8, 3  ;;  %s188_s18 = scalar_lea.sflag (!%p839_p8), [#allocation3], %s900_s8 }
  0x37   : > { %s191_s26 = scalar_lea.vmem (!%p839_p8), [#allocation2], %s479_s11  ;;  %p1011_p12 = scmp.ne.s32.totalorder (!%p839_p8), %s1004_s22, 0 }
  0x3a   : > { %710 = dma.done.wait (%p1011_p12), %s188_s18, 128  }
  0x3b   : > { %712 = vsyncadd (%p1011_p12), %s188_s18, 4294967168 }
  0x3c   : > { %714 = dma.done.wait (%p819_p1), [#allocation6], 512  }
  0x3d   : > { %716 = vsyncadd (%p819_p1), [#allocation6], 4294966784  ;;  %v749_v0 = vmov 0.0   ;;  %vm750_vm0 = vmmov 0   ;;  %v222_v1 = vld [vmem:[#allocation5 + $0x18] sm:$0xff]  ;;  %v221_v2 = vld [vmem:[#allocation5 + $0x10] sm:$0xff] }
  0x3e   : > { %502 = vmatprep.subr.mxu0 %v749_v0  ;;  %510 = vmatprep.mubr.msk.f32.mxu0 %vm750_vm0, %v749_v0  ;;  %v220_v3 = vld [vmem:[#allocation5 + $0x8] sm:$0xff]  ;;  %v219_v4 = vld [vmem:[#allocation5] sm:$0xff]  ;;  %v218_v5 = vld [vmem:[%s191_s26] sm:$0xff]  ;;  %vm230_vm1 = vcmask 261120   ;;  %s513_s20 = smul.u32 96, %s900_s8  ;;  %vm304_vm2 = vcmask 64512  }
  0x3f   : > { %503 = vmatpush3.msra.mxu0 %v222_v1  ;;  %v481_v6 = vld [vmem:[%s999_s2] ss:$0 sm:$0xff]  ;;  %s751_s27 = smov 104   ;;  %s752_s29 = smov 120  }
  0x40   : > { %504 = vmatprep.subr.mxu0 %v749_v0  ;;  %s916_s30 = scalar_lea.vmem [#allocation7], %s513_s20  ;;  %s753_s4 = smov 96  }
  0x41   : > { %505 = vmatpush3.msra.mxu0 %v221_v2  ;;  %s754_s21 = smov 112   ;;  %s755_s5 = smov 80  }
  0x42   : > { %506 = vmatprep.subr.mxu0 %v749_v0  ;;  %s756_s6 = smov 88   ;;  %s757_s7 = smov 64  }
  0x43   : > { %507 = vmatpush3.msra.mxu0 %v220_v3  ;;  %s758_s10 = smov 72   ;;  %s759_s25 = smov 48  }
  0x44   : > { %508 = vmatprep.subr.mxu0 %v749_v0  ;;  %s760_s11 = smov 56   ;;  %s761_s18 = smov 40  }
  0x45   : > { %509 = vmatpush3.msra.mxu0 %v219_v4  ;;  %s514_s26 = smul.u32 1536, %s735_s15  ;;  %s377_s20 = sshll.u32 %s916_s30, 4  ;;  %s947_s20 = int_to_ptr.vmem [resolvable:$true] %s377_s20 }
  0x46   : > { %511 = vmatmul.mubr.msk.f32.vlgmr.msra.gmra.mxu0 %vm230_vm1, %v218_v5  ;;  %s363_s15 = scalar_lea.sflag [#allocation4], %s900_s8 }
 0x106   : > { %v300_v7 = vpop.f32.mrf.mxu0 }
 0x107   : > { %v301_v8 = vadd.f32 %v481_v6, %v300_v7 }
 0x108   : > { %v512_v9 = vpop.f32.mrf.mxu0 }
 0x109   : > { %317 = vrot.lane.b32.xlu1 %v301_v8, %s751_s27  ;;  %307 = vrot.lane.b32.xlu0 %v301_v8, %s752_s29  ;;  %305 = vst.msk [vmem:[%s916_s30] sm:$0xff] %vm304_vm2, %v301_v8  ;;  %s945_s27 = scalar_lea.hbm %s1000_s3, %s514_s26  ;;  %s659_s29 = scalar_lea.vmem %s947_s20, 1536 }
 0x10a   : > { %p660_p1 = scmp.ne.s32.totalorder %s947_s20, %s659_s29 }
 0x10c   : > { %p661_p8 = pnand %p660_p1, %p872_p13 }
 0x10d   : > { %322 = vrot.lane.b32.xlu1 %v301_v8, %s753_s4  ;;  %312 = vrot.lane.b32.xlu0 %v301_v8, %s754_s21  ;;  %s762_s4 = smov [#allocation7]  }
 0x10e   : > { %p662_p10 = pneg %p661_p8  ;;  %s663_s21 = sshll.u32 %s762_s4, 4  ;;  %s664_s21 = int_to_ptr.vmem [resolvable:$false] %s663_s21 }
 0x10f   : > { %p666_p0 = scmp.lt.s32.totalorder %s947_s20, %s664_s21 }
 0x111   : > { %332 = vrot.lane.b32.xlu1 %v301_v8, %s755_s5  ;;  %327 = vrot.lane.b32.xlu0 %v301_v8, %s756_s6  ;;  %s665_s5 = scalar_lea.vmem %s664_s21, 3072 }
 0x112   : > { %p667_p2 = scmp.lt.s32.totalorder %s665_s5, %s659_s29 }
 0x114   : > { %p668_p3 = por %p667_p2, %p666_p0 }
 0x115   : > { %342 = vrot.lane.b32.xlu1 %v301_v8, %s757_s7  ;;  %337 = vrot.lane.b32.xlu0 %v301_v8, %s758_s10 }
 0x116   : > { %p669_p5 = pnand %p668_p3, %p662_p10 }
 0x119   : > { %352 = vrot.lane.b32.xlu1 %v301_v8, %s759_s25  ;;  %347 = vrot.lane.b32.xlu0 %v301_v8, %s760_s11 }
 0x11d   : > { %357 = vrot.lane.b32.xlu0 %v301_v8, %s761_s18 }
 0x17b   : > { %v318_v10 = vpop.permute.xlu1 %317  ;;  %v308_v11 = vpop.permute.xlu0 %307 }
 0x17c   : > { %485 = vst.msk [vmem:[%s916_s30 + $0x18] sm:$0xff] %vm304_vm2, %v318_v10  ;;  %483 = vst.msk [vmem:[%s916_s30 + $0x8] sm:$0xff] %vm304_vm2, %v308_v11 }
 0x17f   : > { %v323_v12 = vpop.permute.xlu1 %322  ;;  %v313_v13 = vpop.permute.xlu0 %312 }
 0x180   : > { %486 = vst.msk [vmem:[%s916_s30 + $0x20] sm:$0xff] %vm304_vm2, %v323_v12  ;;  %484 = vst.msk [vmem:[%s916_s30 + $0x10] sm:$0xff] %vm304_vm2, %v313_v13 }
 0x183   : > { %v333_v14 = vpop.permute.xlu1 %332  ;;  %v328_v15 = vpop.permute.xlu0 %327 }
 0x184   : > { %488 = vst.msk [vmem:[%s916_s30 + $0x30] sm:$0xff] %vm304_vm2, %v333_v14  ;;  %487 = vst.msk [vmem:[%s916_s30 + $0x28] sm:$0xff] %vm304_vm2, %v328_v15 }
 0x187   : > { %v343_v16 = vpop.permute.xlu1 %342  ;;  %v338_v17 = vpop.permute.xlu0 %337 }
 0x188   : > { %490 = vst.msk [vmem:[%s916_s30 + $0x40] sm:$0xff] %vm304_vm2, %v343_v16  ;;  %489 = vst.msk [vmem:[%s916_s30 + $0x38] sm:$0xff] %vm304_vm2, %v338_v17 }
 0x18b   : > { %v353_v18 = vpop.permute.xlu1 %352  ;;  %v348_v19 = vpop.permute.xlu0 %347 }
 0x18c   : > { %492 = vst.msk [vmem:[%s916_s30 + $0x50] sm:$0xff] %vm304_vm2, %v353_v18  ;;  %491 = vst.msk [vmem:[%s916_s30 + $0x48] sm:$0xff] %vm304_vm2, %v348_v19 }
 0x18f   : > { %v358_v20 = vpop.permute.xlu0 %357 }
 0x190   : > { %493 = vst.msk [vmem:[%s916_s30 + $0x58] sm:$0xff] %vm304_vm2, %v358_v20 }
 0x191   : > { %672 = shalt.err (!%p669_p5)
}
 0x192   : > { %s673_s30 = scalar_lea.hbm %s945_s27, 1536  ;;  %s677_s10 = scalar_lea.hbm %s1000_s3, 3072 }
 0x193   : > { %p674_p7 = scmp.ne.s32.totalorder %s945_s27, %s673_s30  ;;  %p678_p9 = scmp.lt.s32.totalorder %s945_s27, %s1000_s3 }
 0x194   : > { %p679_p11 = scmp.lt.s32.totalorder %s677_s10, %s673_s30 }
 0x195   : > { %p675_p6 = pnand %p674_p7, %p872_p13 }
 0x196   : > { %p680_p12 = por %p679_p11, %p678_p9 }
 0x197   : > { %p676_p4 = pneg %p675_p6 }
 0x199   : > { %p681_p1 = pnand %p680_p12, %p676_p4 }
 0x19b   : > { %684 = shalt.err (!%p681_p1)
}
 0x19c   : > { %s763_s18 = smov 128   ;;  %s764_s26 = smov 8  }
 0x19d   : > { %521 = dma.vmem_to_hbm [thread:$0]  (%p872_p13), %s947_s20, 1536, %s945_s27, %s363_s15, %s763_s18, %s763_s18, %s764_s26  }
 0x19e PF: > { %s392_s22 = sand.u32 1, %s723_s12   ;;  %p1012_p8 = scmp.ne.s32.totalorder %s1005_s23, 0 }
 0x19f   : > { %p1013_p10 = scmp.ge.s32.totalorder %s743_s17, 2  ;;  %s393_s24 = scalar_lea.sflag [#allocation4], %s392_s22 }
 0x1a1   : > { %p532_p0 = pnand %p1013_p10, %p1012_p8 }
 0x1a3   : > { %p533_p2 = pneg %p532_p0 }
 0x1a5   : > { %718 = dma.done.wait (%p533_p2), %s393_s24, 1536  }
 0x1a6   : > { %720 = vsyncadd (%p533_p2), %s393_s24, 4294965760  ;;  %s20_s17 = sadd.s32 1, %s743_s17   ;;  %s1014_s12 = smov %s727_s13 }
 0x1a7   : > { %p17_p3 = scmp.ge.s32.totalorder %s20_s17, 4   ;;  %s1015_s13 = smov %s731_s14 }
 0x1a8   : > { %s1016_s14 = smov %s881_s19  ;;  %s1017_s15 = smov %s739_s16 }
 0x1a9   : > { %s1018_s16 = smov %s1020_s28  ;;  %19 = sbr.rel (!%p17_p3) target bundleno = 7 (0x7), region = 92 }
 0x1ae   :  { %398 = vsyncpa [#allocation3], 1 }
 0x1af   :  { %400 = vsyncpa [#allocation3 + $0x1], 1 }
 0x1b0   :  { %401 = vsyncpa [#allocation6], 1 }
 0x1b1   :  { %402 = vsyncpa [#allocation4], 1 }
 0x1b2   :  { %404 = vsyncpa [#allocation4 + $0x1], 1 }

</bundles_post_ra>
